<compile_context>
chip_gen: v5e
topology: v5e:2x2
jax: 0.10.0
libtpu: 0.0.40
codegen_flags: <defaults>
</compile_context>

<pallas_src>
from functools import partial

import jax
import jax.numpy as jnp
from jax.experimental import pallas as pl
from jax.experimental.pallas import tpu as pltpu

_NEG_SLOPE = 0.01   # nn.LeakyReLU default negative_slope
_LANE = 128         # TPU lane width (output columns padded to a multiple of this)
_SUBLANE = 8        # TPU sublane width (batch tile / K-dim padded to a multiple)


def _round_up(x, m):
    return ((x + m - 1) // m) * m


def _leaky_relu(x):
    # one vmul + one vmax (cheaper than compare+select on the VPU)
    return jnp.maximum(x, _NEG_SLOPE * x)


def critic_kernel(x_ref, w1_ref, b1_ref, w2_ref, b2_ref, w3_ref, b3_ref, out_ref):
    # Layer 1: fused [s0 | s1 | A] @ W1_folded  (linear encoders pre-folded)
    h1 = jnp.dot(x_ref[...], w1_ref[...], preferred_element_type=jnp.float32)
    h1 = _leaky_relu(h1 + b1_ref[...])

    # Layer 2: Linear(256, 128) + LeakyReLU
    h2 = jnp.dot(h1.astype(w2_ref.dtype), w2_ref[...],
                 preferred_element_type=jnp.float32)
    h2 = _leaky_relu(h2 + b2_ref[...])

    # Layer 3: Linear(128, action_space) padded to 128 lanes -> dense store
    out = jnp.dot(h2.astype(w3_ref.dtype), w3_ref[...],
                  preferred_element_type=jnp.float32)
    out_ref[...] = (out + b3_ref[...]).astype(out_ref.dtype)


@partial(jax.jit, static_argnames=("tile_b", "matmul_dtype"))
def _critic_forward_jit(s0, s1, A_t, params, *, tile_b, matmul_dtype):
    B = s0.shape[0]
    action_space = params["w3"].shape[1]

    # --- fold linear encoders into the first MLP layer (exact identity) ---
    w_s0 = params["we0"] @ params["w1_0"]
    w_s1 = params["we1"] @ params["w1_1"]
    w1 = jnp.concatenate([w_s0, w_s1, params["w1_a"]], axis=0)
    b1 = (params["b1"]
          + params["be0"] @ params["w1_0"]
          + params["be1"] @ params["w1_1"])

    # --- pad final layer to lane-dense output columns (dense, unmasked vst) ---
    out_cols = _round_up(action_space, _LANE)
    w3 = jnp.pad(params["w3"], ((0, 0), (0, out_cols - action_space)))
    b3 = jnp.pad(params["b3"], ((0, 0), (0, out_cols - action_space)))

    # --- concat layer-1 inputs once; pad K to a sublane multiple (zeros) ---
    x = jnp.concatenate([s0, s1, A_t], axis=1)
    d_in = x.shape[1]
    d_in_pad = _round_up(d_in, _SUBLANE)
    if d_in_pad != d_in:
        x = jnp.pad(x, ((0, 0), (0, d_in_pad - d_in)))
        w1 = jnp.pad(w1, ((0, d_in_pad - d_in), (0, 0)))

    # --- pad batch to the tile size ---
    n_tiles = pl.cdiv(B, tile_b)
    b_pad = n_tiles * tile_b
    if b_pad != B:
        x = jnp.pad(x, ((0, b_pad - B), (0, 0)))

    # bf16 matmul operands, f32 accumulation + f32 biases/elementwise.
    x = x.astype(matmul_dtype)
    w1 = w1.astype(matmul_dtype)
    w2 = params["w2"].astype(matmul_dtype)
    w3 = w3.astype(matmul_dtype)
    b1 = b1.astype(jnp.float32)
    b2 = params["b2"].astype(jnp.float32)
    b3 = b3.astype(jnp.float32)

    h1_dim = w1.shape[1]   # 256
    h2_dim = w2.shape[1]   # 128

    in_specs = [
        pl.BlockSpec((tile_b, d_in_pad), lambda i: (i, 0)),   # x: batch-tiled
        pl.BlockSpec((d_in_pad, h1_dim), lambda i: (0, 0)),   # W1 folded (resident)
        pl.BlockSpec((1, h1_dim), lambda i: (0, 0)),          # b1 (resident)
        pl.BlockSpec((h1_dim, h2_dim), lambda i: (0, 0)),     # W2 (resident)
        pl.BlockSpec((1, h2_dim), lambda i: (0, 0)),          # b2 (resident)
        pl.BlockSpec((h2_dim, out_cols), lambda i: (0, 0)),   # W3 padded (resident)
        pl.BlockSpec((1, out_cols), lambda i: (0, 0)),        # b3 padded (resident)
    ]
    out_specs = pl.BlockSpec((tile_b, out_cols), lambda i: (i, 0))

    out_padded = pl.pallas_call(
        critic_kernel,
        out_shape=jax.ShapeDtypeStruct((b_pad, out_cols), jnp.float32),
        grid=(n_tiles,),
        in_specs=in_specs,
        out_specs=out_specs,
        compiler_params=pltpu.CompilerParams(
            dimension_semantics=("parallel",),  # shard batch tiles on v7x's 2 TCs
        ),
    )(x, w1, b1, w2, b2, w3, b3)

    return out_padded[:B, :action_space]


def critic_forward(S_t, A_t, params, *, max_tile_b=256,
                   matmul_dtype=jnp.bfloat16):
    """S_t: list of [B, window_feat] arrays; A_t: [B, action_space]."""
    s0, s1 = S_t
    B = s0.shape[0]
    # Adapt the batch tile: sublane-aligned, no larger than needed, capped so
    # large batches still pipeline HBM<->VMEM with a small working set.
    tile_b = min(max_tile_b, _round_up(B, _SUBLANE))
    return _critic_forward_jit(s0, s1, A_t, params,
                               tile_b=tile_b, matmul_dtype=matmul_dtype)


def critic_reference(S_t, A_t, params):
    """Pure-JAX f32 reference mirroring the PyTorch forward (no folding)."""
    e0 = S_t[0] @ params["we0"] + params["be0"]
    e1 = S_t[1] @ params["we1"] + params["be1"]
    mlp_in = jnp.concatenate([e0, e1, A_t], axis=1)
    w1 = jnp.concatenate([params["w1_0"], params["w1_1"], params["w1_a"]],
                         axis=0)
    h1 = _leaky_relu(mlp_in @ w1 + params["b1"])
    h2 = _leaky_relu(h1 @ params["w2"] + params["b2"])
    return h2 @ params["w3"] + params["b3"]


def make_params(key, window_feat, enc_out, action_space):
    ks = jax.random.split(key, 12)
    scale = 0.1
    return {
        "we0": jax.random.normal(ks[0], (window_feat, enc_out), jnp.float32) * scale,
        "be0": jax.random.normal(ks[1], (1, enc_out), jnp.float32) * scale,
        "we1": jax.random.normal(ks[2], (window_feat, enc_out), jnp.float32) * scale,
        "be1": jax.random.normal(ks[3], (1, enc_out), jnp.float32) * scale,
        "w1_0": jax.random.normal(ks[4], (enc_out, 256), jnp.float32) * scale,
        "w1_1": jax.random.normal(ks[5], (enc_out, 256), jnp.float32) * scale,
        "w1_a": jax.random.normal(ks[6], (action_space, 256), jnp.float32) * scale,
        "b1": jax.random.normal(ks[7], (1, 256), jnp.float32) * scale,
        "w2": jax.random.normal(ks[8], (256, 128), jnp.float32) * scale,
        "b2": jax.random.normal(ks[9], (1, 128), jnp.float32) * scale,
        "w3": jax.random.normal(ks[10], (128, action_space), jnp.float32) * scale,
        "b3": jax.random.normal(ks[11], (1, action_space), jnp.float32) * scale,
    }


if __name__ == "__main__":
    key = jax.random.PRNGKey(0)
    k_s0, k_s1, k_a, k_p = jax.random.split(key, 4)

    batch = 2
    window_feat = 16     # per-currency window feature size
    enc_out = 8          # crncy_encoder.out_size
    action_space = 4

    S_t = [
        jax.random.normal(k_s0, (batch, window_feat), jnp.float32),
        jax.random.normal(k_s1, (batch, window_feat), jnp.float32),
    ]
    A_t = jax.random.normal(k_a, (batch, action_space), jnp.float32)
    params = make_params(k_p, window_feat, enc_out, action_space)

    out = critic_forward(S_t, A_t, params)
    out = jax.block_until_ready(out)

    ref = critic_reference(S_t, A_t, params)
    assert out.shape == (batch, action_space), out.shape
    # bf16 matmul operands -> loosen tolerance vs the f32 reference.
    max_err = float(jnp.max(jnp.abs(out - ref)))
    assert max_err < 3e-2, f"mismatch vs reference, max_err={max_err}"

    print("KERNEL_OK")
</pallas_src>

<mosaic_0001>
module attributes {stable_mosaic.version = 11 : i64} {
  func.func @critic_kernel(%arg0: i32, %arg1: memref<8x40xbf16, #tpu.memory_space<vmem>>, %arg2: memref<40x256xbf16, #tpu.memory_space<vmem>>, %arg3: memref<1x256xf32, #tpu.memory_space<vmem>>, %arg4: memref<256x128xbf16, #tpu.memory_space<vmem>>, %arg5: memref<1x128xf32, #tpu.memory_space<vmem>>, %arg6: memref<128x128xbf16, #tpu.memory_space<vmem>>, %arg7: memref<1x128xf32, #tpu.memory_space<vmem>>, %arg8: memref<8x128xf32, #tpu.memory_space<vmem>>) attributes {dimension_semantics = [#tpu.dimension_semantics<parallel>], iteration_bounds = array<i64: 1>, scalar_prefetch = 0 : i64, scratch_operands = 0 : i64, tpu.core_type = #tpu.core_type<tc>, window_params = [{transform_indices = @transform_0, window_bounds = array<i64: 8, 40>}, {pipeline_mode = #tpu.pipeline_mode<synchronous>, transform_indices = @transform_1, window_bounds = array<i64: 40, 256>}, {pipeline_mode = #tpu.pipeline_mode<synchronous>, transform_indices = @transform_2, window_bounds = array<i64: 1, 256>}, {pipeline_mode = #tpu.pipeline_mode<synchronous>, transform_indices = @transform_3, window_bounds = array<i64: 256, 128>}, {pipeline_mode = #tpu.pipeline_mode<synchronous>, transform_indices = @transform_4, window_bounds = array<i64: 1, 128>}, {pipeline_mode = #tpu.pipeline_mode<synchronous>, transform_indices = @transform_5, window_bounds = array<i64: 128, 128>}, {pipeline_mode = #tpu.pipeline_mode<synchronous>, transform_indices = @transform_6, window_bounds = array<i64: 1, 128>}, {transform_indices = @transform_7, window_bounds = array<i64: 8, 128>}]} {
    %c0 = arith.constant 0 : index
    %c0_0 = arith.constant 0 : index
    %0 = vector.load %arg1[%c0, %c0_0] : memref<8x40xbf16, #tpu.memory_space<vmem>>, vector<8x40xbf16>
    %c0_1 = arith.constant 0 : index
    %c0_2 = arith.constant 0 : index
    %1 = vector.load %arg2[%c0_1, %c0_2] : memref<40x256xbf16, #tpu.memory_space<vmem>>, vector<40x256xbf16>
    %cst = arith.constant dense<0.000000e+00> : vector<8x256xf32>
    %2 = tpu.matmul %0, %1, %cst {dimension_numbers = #tpu.dot_dimension_numbers<[1], [0], [0], [1], [0, 0, 1, 1], [], []>} : vector<8x40xbf16>, vector<40x256xbf16>, vector<8x256xf32> -> vector<8x256xf32>
    %c0_3 = arith.constant 0 : index
    %c0_4 = arith.constant 0 : index
    %3 = vector.load %arg3[%c0_3, %c0_4] : memref<1x256xf32, #tpu.memory_space<vmem>>, vector<1x256xf32>
    %4 = vector.broadcast %3 : vector<1x256xf32> to vector<8x256xf32>
    %5 = arith.addf %2, %4 : vector<8x256xf32>
    %cst_5 = arith.constant 0.00999999977 : f32
    %6 = vector.broadcast %cst_5 : f32 to vector<8x256xf32>
    %7 = arith.mulf %6, %5 : vector<8x256xf32>
    %8 = arith.maximumf %5, %7 : vector<8x256xf32>
    %9 = arith.truncf %8 : vector<8x256xf32> to vector<8x256xbf16>
    %c0_6 = arith.constant 0 : index
    %c0_7 = arith.constant 0 : index
    %10 = vector.load %arg4[%c0_6, %c0_7] : memref<256x128xbf16, #tpu.memory_space<vmem>>, vector<256x128xbf16>
    %cst_8 = arith.constant dense<0.000000e+00> : vector<8x128xf32>
    %11 = tpu.matmul %9, %10, %cst_8 {dimension_numbers = #tpu.dot_dimension_numbers<[1], [0], [0], [1], [0, 0, 1, 1], [], []>} : vector<8x256xbf16>, vector<256x128xbf16>, vector<8x128xf32> -> vector<8x128xf32>
    %c0_9 = arith.constant 0 : index
    %c0_10 = arith.constant 0 : index
    %12 = vector.load %arg5[%c0_9, %c0_10] : memref<1x128xf32, #tpu.memory_space<vmem>>, vector<1x128xf32>
    %13 = vector.broadcast %12 : vector<1x128xf32> to vector<8x128xf32>
    %14 = arith.addf %11, %13 : vector<8x128xf32>
    %cst_11 = arith.constant 0.00999999977 : f32
    %15 = vector.broadcast %cst_11 : f32 to vector<8x128xf32>
    %16 = arith.mulf %15, %14 : vector<8x128xf32>
    %17 = arith.maximumf %14, %16 : vector<8x128xf32>
    %18 = arith.truncf %17 : vector<8x128xf32> to vector<8x128xbf16>
    %c0_12 = arith.constant 0 : index
    %c0_13 = arith.constant 0 : index
    %19 = vector.load %arg6[%c0_12, %c0_13] : memref<128x128xbf16, #tpu.memory_space<vmem>>, vector<128x128xbf16>
    %cst_14 = arith.constant dense<0.000000e+00> : vector<8x128xf32>
    %20 = tpu.matmul %18, %19, %cst_14 {dimension_numbers = #tpu.dot_dimension_numbers<[1], [0], [0], [1], [0, 0, 1, 1], [], []>} : vector<8x128xbf16>, vector<128x128xbf16>, vector<8x128xf32> -> vector<8x128xf32>
    %c0_15 = arith.constant 0 : index
    %c0_16 = arith.constant 0 : index
    %21 = vector.load %arg7[%c0_15, %c0_16] : memref<1x128xf32, #tpu.memory_space<vmem>>, vector<1x128xf32>
    %22 = vector.broadcast %21 : vector<1x128xf32> to vector<8x128xf32>
    %23 = arith.addf %20, %22 : vector<8x128xf32>
    %c0_17 = arith.constant 0 : index
    %c0_18 = arith.constant 0 : index
    %24 = vector.load %arg8[%c0_17, %c0_18] : memref<8x128xf32, #tpu.memory_space<vmem>>, vector<8x128xf32>
    tpu.vector_store %arg8[%c0_17, %c0_18], %23 {strides = array<i32>} : memref<8x128xf32, #tpu.memory_space<vmem>>, vector<8x128xf32>,
    return
  }
  func.func @transform_0(%arg0: i32) -> (i32, i32) {
    %c0_i32 = arith.constant 0 : i32
    %c0_i32_0 = arith.constant 0 : i32
    return %arg0, %c0_i32 : i32, i32
  }
  func.func @transform_1(%arg0: i32) -> (i32, i32) {
    %c0_i32 = arith.constant 0 : i32
    %c0_i32_0 = arith.constant 0 : i32
    %c0_i32_1 = arith.constant 0 : i32
    return %c0_i32, %c0_i32_0 : i32, i32
  }
  func.func @transform_2(%arg0: i32) -> (i32, i32) {
    %c0_i32 = arith.constant 0 : i32
    %c0_i32_0 = arith.constant 0 : i32
    %c0_i32_1 = arith.constant 0 : i32
    return %c0_i32, %c0_i32_0 : i32, i32
  }
  func.func @transform_3(%arg0: i32) -> (i32, i32) {
    %c0_i32 = arith.constant 0 : i32
    %c0_i32_0 = arith.constant 0 : i32
    %c0_i32_1 = arith.constant 0 : i32
    return %c0_i32, %c0_i32_0 : i32, i32
  }
  func.func @transform_4(%arg0: i32) -> (i32, i32) {
    %c0_i32 = arith.constant 0 : i32
    %c0_i32_0 = arith.constant 0 : i32
    %c0_i32_1 = arith.constant 0 : i32
    return %c0_i32, %c0_i32_0 : i32, i32
  }
  func.func @transform_5(%arg0: i32) -> (i32, i32) {
    %c0_i32 = arith.constant 0 : i32
    %c0_i32_0 = arith.constant 0 : i32
    %c0_i32_1 = arith.constant 0 : i32
    return %c0_i32, %c0_i32_0 : i32, i32
  }
  func.func @transform_6(%arg0: i32) -> (i32, i32) {
    %c0_i32 = arith.constant 0 : i32
    %c0_i32_0 = arith.constant 0 : i32
    %c0_i32_1 = arith.constant 0 : i32
    return %c0_i32, %c0_i32_0 : i32, i32
  }
  func.func @transform_7(%arg0: i32) -> (i32, i32) {
    %c0_i32 = arith.constant 0 : i32
    %c0_i32_0 = arith.constant 0 : i32
    return %arg0, %c0_i32 : i32, i32
  }
}

</mosaic_0001>

<bundles_post_ra>
// kernel: _critic_forward_jit.1
= control target key start
LH: loop header
LB: loop body
LE: loop exit
PB: predicated region body
PF: predicated region fallthrough
CT: control target
= control target key end

     0   :  { %vm68_vm0 = vcmask 1043456   ;;  %vm64_vm1 = vcmask 326656   ;;  %s654_s1 = inlined_call_operand.vmem [shape: bf16[40,256], index: 1, kind: input, shape index: {}]   ;;  %s655_s3 = inlined_call_operand.vmem [shape: bf16[256,128], index: 3, kind: input, shape index: {}]   ;;  %s656_s0 = inlined_call_operand.vmem [shape: bf16[8,40], index: 0, kind: input, shape index: {}]   ;;  %s657_s4 = inlined_call_operand.vmem [shape: f32[1,128], index: 4, kind: input, shape index: {}]   ;;  %s658_s5 = inlined_call_operand.vmem [shape: bf16[128,128], index: 5, kind: input, shape index: {}]   ;;  %s659_s2 = inlined_call_operand.vmem [shape: f32[1,256], index: 2, kind: input, shape index: {}]   ;;  %s660_s6 = inlined_call_operand.vmem [shape: f32[1,128], index: 6, kind: input, shape index: {}]   ;;  %s661_s7 = inlined_call_operand.vmem [shape: f32[8,128], index: 7, kind: output, shape index: {}]  }
   0x1   :  { %v32_v0 = vld [vmem:[%s654_s1 + $0x20] sm:$0xff]  ;;  %v364_v3 = vld [vmem:[%s654_s1 + $0x10] sm:$0xf]  ;;  %v471_v4 = vld [vmem:[%s654_s1 + $0x14] sm:$0xf0] }
   0x2   :  { %v52_v1 = vunpack.c.l.b16 %v32_v0  ;;  %v479_v5 = vld [vmem:[%s655_s3 + $0x38] sm:$0xff]  ;;  %v53_v6 = vunpack.c.h.b16 %v32_v0  ;;  %v478_v8 = vld [vmem:[%s655_s3 + $0x30] sm:$0xff]  ;;  %v365_v10 = vor.u32 %v471_v4, %v364_v3  ;;  %v356_v11 = vld [vmem:[%s654_s1] sm:$0xf] }
   0x3   :  { %239 = vmatpush.bf16.msra.mxu2 %v479_v5  ;;  %v487_v9 = vld [vmem:[%s655_s3 + $0x78] sm:$0xff]  ;;  %v469_v12 = vld [vmem:[%s654_s1 + $0x4] sm:$0xf0]  ;;  %v486_v13 = vld [vmem:[%s655_s3 + $0x70] sm:$0xff] }
   0x4   :  { %v58_v2 = vpack.c.b16 %v52_v1, %v52_v1  ;;  %252 = vmatpush.bf16.msra.mxu3 %v487_v9  ;;  %v59_v14 = vpack.c.b16 %v53_v6, %v53_v6  ;;  %v477_v15 = vld [vmem:[%s655_s3 + $0x28] sm:$0xff]  ;;  %v357_v16 = vor.u32 %v469_v12, %v356_v11  ;;  %v470_v18 = vld [vmem:[%s654_s1 + $0x14] sm:$0xf]  ;;  %v366_v19 = vld [vmem:[%s654_s1 + $0x18] sm:$0xf0] }
   0x5   :  { %v476_v20 = vld [vmem:[%s655_s3 + $0x20] sm:$0xff]  ;;  %v369_v22 = vor.u32 %v470_v18, %v366_v19  ;;  %v358_v24 = vld [vmem:[%s654_s1 + $0x8] sm:$0xf0]  ;;  %v475_v25 = vld [vmem:[%s655_s3 + $0x18] sm:$0xff] }
   0x6   :  { %v70_v7 = vsel %vm68_vm0, %v58_v2, 0  ;;  %v73_v17 = vsel %vm68_vm0, %v59_v14, 0  ;;  %v27_v21 = vld [vmem:[%s656_s0] sm:$0xf]  ;;  %v468_v23 = vld [vmem:[%s654_s1 + $0x4] sm:$0xf] }
   0x7   :  { %80 = vmatpush.bf16.msra.mxu1 %v70_v7  ;;  %240 = vmatpush.bf16.msra.mxu2 %v478_v8  ;;  %v361_v26 = vor.u32 %v468_v23, %v358_v24  ;;  %v474_v27 = vld [vmem:[%s655_s3 + $0x10] sm:$0xff]  ;;  %v473_v28 = vld [vmem:[%s655_s3 + $0x8] sm:$0xff]  ;;  %v472_v30 = vld [vmem:[%s655_s3] sm:$0xff] }
   0x8   :  { %253 = vmatpush.bf16.msra.mxu3 %v486_v13  ;;  %v485_v29 = vld [vmem:[%s655_s3 + $0x68] sm:$0xff]  ;;  %v484_v31 = vld [vmem:[%s655_s3 + $0x60] sm:$0xff]  ;;  %v483_v32 = vld [vmem:[%s655_s3 + $0x58] sm:$0xff] }
   0x9   :  { %v482_v33 = vld [vmem:[%s655_s3 + $0x50] sm:$0xff]  ;;  %v481_v34 = vld [vmem:[%s655_s3 + $0x48] sm:$0xff]  ;;  %v480_v35 = vld [vmem:[%s655_s3 + $0x40] sm:$0xff] }
   0xa   :  { %v495_v36 = vld [vmem:[%s658_s5 + $0x38] sm:$0xff]  ;;  %v33_v37 = vld [vmem:[%s659_s2] sm:$0x3]  ;;  %v494_v38 = vld [vmem:[%s658_s5 + $0x30] sm:$0xff] }
   0xb   :  { %81 = vmatpush.bf16.msra.mxu1 %v365_v10  ;;  %241 = vmatpush.bf16.msra.mxu2 %v477_v15  ;;  %v35_v39 = vperm.slane %v33_v37, 0  ;;  %v36_v46 = vperm.slane %v33_v37, 1  ;;  %v493_v53 = vld [vmem:[%s658_s5 + $0x28] sm:$0xff]  ;;  %v492_v54 = vld [vmem:[%s658_s5 + $0x20] sm:$0xff]  ;;  %v491_v55 = vld [vmem:[%s658_s5 + $0x18] sm:$0xff] }
   0xc   :  { %254 = vmatpush.bf16.msra.mxu3 %v485_v29  ;;  %336 = vmatpush.bf16.msra.mxu0 %v495_v36  ;;  %v490_v56 = vld [vmem:[%s658_s5 + $0x10] sm:$0xff]  ;;  %v489_v57 = vld [vmem:[%s658_s5 + $0x8] sm:$0xff]  ;;  %v488_v58 = vld [vmem:[%s658_s5] sm:$0xff] }
   0xd   :  { %v496_v61 = vld [vmem:[%s657_s4] ss:$0 sm:$0xff] }
   0xe   :  { %v497_v5 = vld [vmem:[%s660_s6] ss:$0 sm:$0xff] }
   0xf   :  { %82 = vmatpush.bf16.msra.mxu1 %v357_v16  ;;  %242 = vmatpush.bf16.msra.mxu2 %v476_v20 }
  0x10   :  { %255 = vmatpush.bf16.msra.mxu3 %v484_v31  ;;  %337 = vmatpush.bf16.msra.mxu0 %v494_v38 }
  0x12   :  { %370 = vmatmul.msk.bf16.vlgmr.msra.gmra.mxu1 %vm64_vm1, %v27_v21 }
  0x13   :  { %93 = vmatpush.bf16.msrb.mxu1 %v73_v17  ;;  %243 = vmatpush.bf16.msra.mxu2 %v475_v25 }
  0x14   :  { %256 = vmatpush.bf16.msra.mxu3 %v483_v32  ;;  %338 = vmatpush.bf16.msra.mxu0 %v493_v53 }
  0x17   :  { %94 = vmatpush.bf16.msrb.mxu1 %v369_v22  ;;  %244 = vmatpush.bf16.msra.mxu2 %v474_v27 }
  0x18   :  { %257 = vmatpush.bf16.msra.mxu3 %v482_v33  ;;  %339 = vmatpush.bf16.msra.mxu0 %v492_v54 }
  0x1b   :  { %95 = vmatpush.bf16.msrb.mxu1 %v361_v26  ;;  %245 = vmatpush.bf16.msra.mxu2 %v473_v28 }
  0x1c   :  { %258 = vmatpush.bf16.msra.mxu3 %v481_v34  ;;  %340 = vmatpush.bf16.msra.mxu0 %v491_v55 }
  0x1f   :  { %246 = vmatpush.bf16.msra.mxu2 %v472_v30 }
  0x20   :  { %259 = vmatpush.bf16.msra.mxu3 %v480_v35  ;;  %341 = vmatpush.bf16.msra.mxu0 %v490_v56 }
  0x22   :  { %371 = vmatmul.msk.bf16.vlgmr.msrb.gmra.mxu1 %vm64_vm1, %v27_v21 }
  0x24   :  { %342 = vmatpush.bf16.msra.mxu0 %v489_v57 }
  0x28   :  { %343 = vmatpush.bf16.msra.mxu0 %v488_v58 }
  0x8f   :  { %v84_v40 = vpop.f32.mrf.mxu1 }
  0x90   :  { %v85_v41 = vadd.f32 %v84_v40, %v35_v39 }
  0x92   :  { %v101_v42 = vmul.f32 0.01, %v85_v41 }
  0x94   :  { %v103_v43 = vmax.f32 %v85_v41, %v101_v42 }
  0x96   :  { %v105_v44 = vpack.c.bf16 %v103_v43, %v103_v43 }
  0x97   :  { %v86_v45 = vpop.f32.mrf.mxu1 }
  0x98   :  { %247 = vmatmul.bf16.vlgmr.msra.gmra.mxu2 %v105_v44 }
  0x9f   :  { %v97_v47 = vpop.f32.mrf.mxu1 }
  0xa0   :  { %v98_v48 = vadd.f32 %v97_v47, %v36_v46 }
  0xa2   :  { %v102_v49 = vmul.f32 0.01, %v98_v48 }
  0xa4   :  { %v104_v50 = vmax.f32 %v98_v48, %v102_v49 }
  0xa6   :  { %v106_v51 = vpack.c.bf16 %v104_v50, %v104_v50 }
  0xa7   :  { %v99_v52 = vpop.f32.mrf.mxu1 }
  0xa8   :  { %260 = vmatmul.bf16.vlgmr.msra.gmra.mxu3 %v106_v51 }
 0x11b   :  { %v248_v59 = vpop.f32.mrf.mxu2 }
 0x11c   :  { %v249_v62 = vadd.f32 %v496_v61, %v248_v59 }
 0x123   :  { %v250_v60 = vpop.f32.mrf.mxu2 }
 0x12b   :  { %v261_v63 = vpop.f32.mrf.mxu3 }
 0x12c   :  { %v262_v0 = vadd.f32 %v261_v63, %v249_v62 }
 0x12e   :  { %v265_v1 = vmul.f32 0.01, %v262_v0 }
 0x130   :  { %v266_v2 = vmax.f32 %v262_v0, %v265_v1 }
 0x132   :  { %v267_v3 = vpack.c.bf16 %v266_v2, %v266_v2 }
 0x133   :  { %v263_v4 = vpop.f32.mrf.mxu3 }
 0x134   :  { %344 = vmatmul.bf16.vlgmr.msra.gmra.mxu0 %v267_v3 }
 0x1b1   :  { %v345_v6 = vpop.f32.mrf.mxu0 }
 0x1b2   :  { %v346_v7 = vadd.f32 %v497_v5, %v345_v6 }
 0x1b4   :  { %349 = vst [vmem:[%s661_s7] sm:$0xff] %v346_v7 }
 0x1b9   :  { %v347_v8 = vpop.f32.mrf.mxu0 }

</bundles_post_ra>
